<compile_context>
chip_gen: v5e
topology: v5e:2x2
jax: 0.10.0
libtpu: 0.0.40
codegen_flags: <defaults>
</compile_context>

<pallas_src>
import functools

import jax
import jax.numpy as jnp
from jax.experimental import pallas as pl
from jax.experimental.pallas import tpu as pltpu

KH = KW = 5                      # conv kernel size
C_IN = 1
C_OUT = 20
NPOOL = 4                        # 2x2 pool window -> 4 conv positions per cell
KK = KH * KW                     # 25 patch elements
GROUP = ((C_OUT + 7) // 8) * 8   # 24: sublane-aligned row stride per pool offset


def _conv_relu_pool_kernel(p_ref, w_ref, b_ref, o_ref):
    """Fused conv-as-one-matmul + 2x2 max-pool + bias + ReLU.

    p_ref: (NPOOL*KK, Mt)  bf16/f32 im2col patches; rows=[pool_offset, patch_elem],
                           cols = lane-dense [batch, pooled_row, pooled_col]
    w_ref: (NPOOL*GROUP, NPOOL*KK) block-diagonal conv weight (same dtype as p)
    b_ref: (C_OUT, 1) f32
    o_ref: (C_OUT, Mt) f32
    """
    # Single MXU push covering all four pool offsets at once; f32 accumulation.
    y = jnp.dot(w_ref[...], p_ref[...], preferred_element_type=jnp.float32)
    # MaxPool2d(2,2) == max over the four sublane-aligned row groups.
    pooled = jnp.maximum(
        jnp.maximum(y[0 * GROUP:0 * GROUP + C_OUT],
                    y[1 * GROUP:1 * GROUP + C_OUT]),
        jnp.maximum(y[2 * GROUP:2 * GROUP + C_OUT],
                    y[3 * GROUP:3 * GROUP + C_OUT]),
    )
    # Bias + ReLU hoisted after the max (both monotone -> identical numerics).
    o_ref[...] = jnp.maximum(pooled + b_ref[...], 0.0).astype(o_ref.dtype)


def _im2col_pool_cols(x, ph, pw):
    """x: (N, 1, H, W) -> (NPOOL*KK, N*PH*PW) laid out for the kernel.

    Row index = d*KK + (kh*KW + kw), d = position inside the 2x2 pool window.
    Column index = b*PH*PW + pr*PW + pc.  Strided slices reproduce MaxPool's
    floor behaviour (odd conv-output sizes drop the last row/col, like PyTorch).
    Under jit this whole function fuses into a single XLA fusion.
    """
    n = x.shape[0]
    img = x[:, 0]                                       # (N, H, W)
    rows = []
    for dr in range(2):
        for dc in range(2):
            for kh in range(KH):
                for kw in range(KW):
                    r0, c0 = dr + kh, dc + kw
                    patch = jax.lax.slice(
                        img,
                        (0, r0, c0),
                        (n, r0 + 2 * (ph - 1) + 1, c0 + 2 * (pw - 1) + 1),
                        (1, 2, 2))                      # (N, PH, PW)
                    rows.append(patch.reshape(n * ph * pw))
    return jnp.stack(rows, axis=0)                      # (100, N*PH*PW)


def _round_up(x, k):
    return ((x + k - 1) // k) * k


@functools.partial(jax.jit, static_argnames=("compute_dtype", "lane_tile"))
def c1_forward(img, weight, bias, *, compute_dtype=jnp.bfloat16, lane_tile=8192):
    """C1: Conv2d(1,20,5,bias) -> ReLU -> MaxPool2d(2,2), NCHW in / NCHW out."""
    n, cin, h, w = img.shape
    assert cin == C_IN, cin
    oh, ow = h - KH + 1, w - KW + 1
    ph, pw = oh // 2, ow // 2                # MaxPool2d(2,2) floors odd sizes
    m = n * ph * pw

    # im2col produced directly in the kernel's (K, lanes) layout (one fusion
    # under jit), cast to the compute dtype (bf16 halves its HBM round-trip).
    p = _im2col_pool_cols(img, ph, pw).astype(compute_dtype)      # (100, M)

    # --- Lane-axis tiling: balanced, 128-multiple tiles, >=2 when possible ---
    m_pad0 = _round_up(m, 128)
    n_tiles = pl.cdiv(m_pad0, lane_tile)     # tiles needed for the VMEM budget
    if m_pad0 >= 256:
        n_tiles = max(n_tiles, 2)            # v7x: keep both TensorCores busy
    m_tile = _round_up(pl.cdiv(m_pad0, n_tiles), 128)
    n_tiles = pl.cdiv(m_pad0, m_tile)
    m_pad = n_tiles * m_tile
    if m_pad > m:                            # zero-pad -> unmasked vld/vst,
        p = jnp.pad(p, ((0, 0), (0, m_pad - m)))   # no reliance on OOB clipping

    # Block-diagonal weight: one (20,25) copy per pool offset, row groups padded
    # to a multiple of 8 so the in-kernel max needs no sublane shifts.
    w_mat = weight.reshape(C_OUT, KK).astype(compute_dtype)
    w_big = jnp.zeros((NPOOL * GROUP, NPOOL * KK), compute_dtype)
    for d in range(NPOOL):
        w_big = w_big.at[d * GROUP:d * GROUP + C_OUT,
                         d * KK:(d + 1) * KK].set(w_mat)
    b_col = bias.reshape(C_OUT, 1).astype(jnp.float32)

    out = pl.pallas_call(
        _conv_relu_pool_kernel,
        out_shape=jax.ShapeDtypeStruct((C_OUT, m_pad), jnp.float32),
        grid_spec=pltpu.PrefetchScalarGridSpec(
            num_scalar_prefetch=0,
            grid=(n_tiles,),
            in_specs=[
                pl.BlockSpec((NPOOL * KK, m_tile), lambda i: (0, i)),
                # Constant index_maps: invariant operands are DMA'd once.
                pl.BlockSpec((NPOOL * GROUP, NPOOL * KK), lambda i: (0, 0)),
                pl.BlockSpec((C_OUT, 1), lambda i: (0, 0)),
            ],
            out_specs=pl.BlockSpec((C_OUT, m_tile), lambda i: (0, i)),
        ),
        compiler_params=pltpu.CompilerParams(
            dimension_semantics=("parallel",),
            vmem_limit_bytes=32 * 1024 * 1024),
    )(p, w_big, b_col)

    # (C_OUT, M) -> (N, C_OUT, PH, PW): only the two leading axes swap, minor
    # (spatial) dims untouched -> cheap XLA copy, fused with the pad-slice.
    return out[:, :m].reshape(C_OUT, n, ph, pw).transpose(1, 0, 2, 3)


def _reference(img, weight, bias):
    conv = jax.lax.conv_general_dilated(
        img, weight, window_strides=(1, 1), padding="VALID",
        dimension_numbers=("NCHW", "OIHW", "NCHW"))
    conv = conv + bias.reshape(1, C_OUT, 1, 1)
    relu = jnp.maximum(conv, 0.0)
    return jax.lax.reduce_window(
        relu, -jnp.inf, jax.lax.max,
        window_dimensions=(1, 1, 2, 2), window_strides=(1, 1, 2, 2),
        padding="VALID")


if __name__ == "__main__":
    key = jax.random.PRNGKey(0)
    k_img, k_w, k_b = jax.random.split(key, 3)

    # Small input consistent with the module: N=2, C_in=1, 16x16 spatial.
    img = jax.random.normal(k_img, (2, 1, 16, 16), dtype=jnp.float32)

    # Deterministic parameter init (Conv2d(1, 20, 5) shapes).
    fan_in = C_IN * KH * KW
    bound = 1.0 / (fan_in ** 0.5)
    weight = jax.random.uniform(k_w, (C_OUT, C_IN, KH, KW),
                                dtype=jnp.float32, minval=-bound, maxval=bound)
    bias = jax.random.uniform(k_b, (C_OUT,),
                              dtype=jnp.float32, minval=-bound, maxval=bound)

    ref = _reference(img, weight, bias)

    # Default (bf16 operand stream, f32 accumulation) — loosened tolerance.
    out = jax.block_until_ready(c1_forward(img, weight, bias))
    assert out.shape == (2, 20, 6, 6), out.shape
    assert jnp.allclose(out, ref, atol=2e-2, rtol=2e-2), "bf16 path mismatch"

    # f32 compute path stays bit-tight against the reference.
    out_f32 = jax.block_until_ready(
        c1_forward(img, weight, bias, compute_dtype=jnp.float32))
    assert jnp.allclose(out_f32, ref, atol=1e-4, rtol=1e-4), "f32 path mismatch"

    print("KERNEL_OK")
</pallas_src>

<mosaic_0001>
module attributes {stable_mosaic.version = 11 : i64} {
  func.func @_conv_relu_pool_kernel(%arg0: i32, %arg1: memref<100x128xbf16, #tpu.memory_space<vmem>>, %arg2: memref<96x100xbf16, #tpu.memory_space<vmem>>, %arg3: memref<20x1xf32, #tpu.memory_space<vmem>>, %arg4: memref<20x128xf32, #tpu.memory_space<vmem>>) attributes {dimension_semantics = [#tpu.dimension_semantics<parallel>], iteration_bounds = array<i64: 1>, scalar_prefetch = 0 : i64, scratch_operands = 0 : i64, tpu.core_type = #tpu.core_type<tc>, window_params = [{transform_indices = @transform_0, window_bounds = array<i64: 100, 128>}, {pipeline_mode = #tpu.pipeline_mode<synchronous>, transform_indices = @transform_1, window_bounds = array<i64: 96, 100>}, {pipeline_mode = #tpu.pipeline_mode<synchronous>, transform_indices = @transform_2, window_bounds = array<i64: 20, 1>}, {transform_indices = @transform_3, window_bounds = array<i64: 20, 128>}]} {
    %c0 = arith.constant 0 : index
    %c0_0 = arith.constant 0 : index
    %0 = vector.load %arg2[%c0, %c0_0] : memref<96x100xbf16, #tpu.memory_space<vmem>>, vector<96x100xbf16>
    %c0_1 = arith.constant 0 : index
    %c0_2 = arith.constant 0 : index
    %1 = vector.load %arg1[%c0_1, %c0_2] : memref<100x128xbf16, #tpu.memory_space<vmem>>, vector<100x128xbf16>
    %cst = arith.constant dense<0.000000e+00> : vector<96x128xf32>
    %2 = tpu.matmul %0, %1, %cst {dimension_numbers = #tpu.dot_dimension_numbers<[1], [0], [0], [1], [0, 0, 1, 1], [], []>} : vector<96x100xbf16>, vector<100x128xbf16>, vector<96x128xf32> -> vector<96x128xf32>
    %3 = vector.extract_strided_slice %2 {offsets = [0, 0], sizes = [20, 128], strides = [1, 1]} : vector<96x128xf32> to vector<20x128xf32>
    %4 = vector.extract_strided_slice %2 {offsets = [24, 0], sizes = [20, 128], strides = [1, 1]} : vector<96x128xf32> to vector<20x128xf32>
    %5 = arith.maximumf %3, %4 : vector<20x128xf32>
    %6 = vector.extract_strided_slice %2 {offsets = [48, 0], sizes = [20, 128], strides = [1, 1]} : vector<96x128xf32> to vector<20x128xf32>
    %7 = vector.extract_strided_slice %2 {offsets = [72, 0], sizes = [20, 128], strides = [1, 1]} : vector<96x128xf32> to vector<20x128xf32>
    %8 = arith.maximumf %6, %7 : vector<20x128xf32>
    %9 = arith.maximumf %5, %8 : vector<20x128xf32>
    %c0_3 = arith.constant 0 : index
    %c0_4 = arith.constant 0 : index
    %10 = vector.load %arg3[%c0_3, %c0_4] : memref<20x1xf32, #tpu.memory_space<vmem>>, vector<20x1xf32>
    %11 = vector.broadcast %10 : vector<20x1xf32> to vector<20x128xf32>
    %12 = arith.addf %9, %11 : vector<20x128xf32>
    %cst_5 = arith.constant 0.000000e+00 : f32
    %13 = vector.broadcast %cst_5 : f32 to vector<20x128xf32>
    %14 = arith.maximumf %12, %13 : vector<20x128xf32>
    %c0_6 = arith.constant 0 : index
    %c0_7 = arith.constant 0 : index
    %15 = vector.load %arg4[%c0_6, %c0_7] : memref<20x128xf32, #tpu.memory_space<vmem>>, vector<20x128xf32>
    tpu.vector_store %arg4[%c0_6, %c0_7], %14 {strides = array<i32>} : memref<20x128xf32, #tpu.memory_space<vmem>>, vector<20x128xf32>,
    return
  }
  func.func @transform_0(%arg0: i32) -> (i32, i32) {
    %c0_i32 = arith.constant 0 : i32
    %c0_i32_0 = arith.constant 0 : i32
    return %c0_i32, %arg0 : i32, i32
  }
  func.func @transform_1(%arg0: i32) -> (i32, i32) {
    %c0_i32 = arith.constant 0 : i32
    %c0_i32_0 = arith.constant 0 : i32
    %c0_i32_1 = arith.constant 0 : i32
    return %c0_i32, %c0_i32_0 : i32, i32
  }
  func.func @transform_2(%arg0: i32) -> (i32, i32) {
    %c0_i32 = arith.constant 0 : i32
    %c0_i32_0 = arith.constant 0 : i32
    %c0_i32_1 = arith.constant 0 : i32
    return %c0_i32, %c0_i32_0 : i32, i32
  }
  func.func @transform_3(%arg0: i32) -> (i32, i32) {
    %c0_i32 = arith.constant 0 : i32
    %c0_i32_0 = arith.constant 0 : i32
    return %c0_i32, %arg0 : i32, i32
  }
}

</mosaic_0001>

<bundles_post_ra>
// kernel: c1_forward.1
= control target key start
LH: loop header
LB: loop body
LE: loop exit
PB: predicated region body
PF: predicated region fallthrough
CT: control target
= control target key end

     0   :  { %vm128_vm0 = vcmask 1041408   ;;  %v301_v10 = vmov 0   ;;  %vm109_vm1 = vcmask 818176   ;;  %s379_s0 = inlined_call_operand.vmem [shape: bf16[100,128], index: 0, kind: input, shape index: {}]   ;;  %s380_s2 = inlined_call_operand.vmem [shape: f32[20,1], index: 2, kind: input, shape index: {}]   ;;  %s381_s1 = inlined_call_operand.vmem [shape: bf16[96,100], index: 1, kind: input, shape index: {}]   ;;  %s382_s3 = inlined_call_operand.vmem [shape: f32[20,128], index: 3, kind: output, shape index: {}]  }
   0x1   :  { %v39_v0 = vld [vmem:[%s379_s0 + $0x30] sm:$0x3]  ;;  %v276_v4 = vld [vmem:[%s379_s0 + $0x28] sm:$0xff]  ;;  %v275_v5 = vld [vmem:[%s379_s0 + $0x20] sm:$0xff]  ;;  %299 = vset.pattern.permute.xlu0 %v301_v10  ;;  %300 = vset.pattern.permute.xlu1 %v301_v10 }
   0x2   :  { %v95_v1 = vunpack.c.l.b16 %v39_v0  ;;  %v274_v6 = vld [vmem:[%s379_s0 + $0x18] sm:$0xff]  ;;  %v273_v7 = vld [vmem:[%s379_s0 + $0x10] sm:$0xff]  ;;  %v180_v8 = vld [vmem:[%s380_s2] sm:$0xff] }
   0x3   :  { %v182_v9 = vld [vmem:[%s380_s2 + $0x10] sm:$0xf]  ;;  %185 = vperm.xlu0 %299, %v180_v8   ;;  %v272_v11 = vld [vmem:[%s379_s0 + $0x8] sm:$0xff]  ;;  %v271_v12 = vld [vmem:[%s379_s0] sm:$0xff] }
   0x4   :  { %v102_v2 = vpack.c.b16 %v95_v1, %v95_v1  ;;  %195 = vperm.xlu1 %300, %v182_v9   ;;  %v181_v13 = vld [vmem:[%s380_s2 + $0x8] sm:$0xff]  ;;  %v269_v15 = vld [vmem:[%s381_s1 + $0x20] sm:$0xff]  ;;  %v268_v17 = vld [vmem:[%s381_s1 + $0x18] sm:$0xff] }
   0x5   :  { %v266_v14 = vld [vmem:[%s381_s1 + $0x8] sm:$0xff]  ;;  %v265_v16 = vld [vmem:[%s381_s1] sm:$0xff]  ;;  %v267_v18 = vld [vmem:[%s381_s1 + $0x10] sm:$0xff] }
   0x6   :  { %v130_v3 = vsel %vm128_vm0, %v102_v2, 0  ;;  %v270_v19 = vld [vmem:[%s381_s1 + $0x28] sm:$0xff] }
   0x7   :  { %277 = vmatpush.bf16.msra.mxu1 %v130_v3  ;;  %279 = vmatpush.bf16.msra.mxu3 %v130_v3 }
   0x8   :  { %133 = vmatpush.bf16.msra.mxu0 %v130_v3  ;;  %278 = vmatpush.bf16.msra.mxu2 %v130_v3 }
   0xb   :  { %280 = vmatpush.bf16.msra.mxu1 %v276_v4  ;;  %282 = vmatpush.bf16.msra.mxu3 %v276_v4 }
   0xc   :  { %134 = vmatpush.bf16.msra.mxu0 %v276_v4  ;;  %281 = vmatpush.bf16.msra.mxu2 %v276_v4 }
   0xd   :  { %190 = vperm.xlu0 %299, %v181_v13  }
   0xf   :  { %283 = vmatpush.bf16.msra.mxu1 %v275_v5  ;;  %285 = vmatpush.bf16.msra.mxu3 %v275_v5 }
  0x10   :  { %135 = vmatpush.bf16.msra.mxu0 %v275_v5  ;;  %284 = vmatpush.bf16.msra.mxu2 %v275_v5 }
  0x13   :  { %286 = vmatpush.bf16.msra.mxu1 %v274_v6  ;;  %288 = vmatpush.bf16.msra.mxu3 %v274_v6 }
  0x14   :  { %136 = vmatpush.bf16.msra.mxu0 %v274_v6  ;;  %287 = vmatpush.bf16.msra.mxu2 %v274_v6 }
  0x17   :  { %289 = vmatpush.bf16.msra.mxu1 %v273_v7  ;;  %291 = vmatpush.bf16.msra.mxu3 %v273_v7 }
  0x18   :  { %137 = vmatpush.bf16.msra.mxu0 %v273_v7  ;;  %290 = vmatpush.bf16.msra.mxu2 %v273_v7 }
  0x1b   :  { %292 = vmatpush.bf16.msra.mxu1 %v272_v11  ;;  %294 = vmatpush.bf16.msra.mxu3 %v272_v11 }
  0x1c   :  { %138 = vmatpush.bf16.msra.mxu0 %v272_v11  ;;  %293 = vmatpush.bf16.msra.mxu2 %v272_v11 }
  0x1f   :  { %295 = vmatpush.bf16.msra.mxu1 %v271_v12  ;;  %297 = vmatpush.bf16.msra.mxu3 %v271_v12 }
  0x20   :  { %139 = vmatpush.bf16.msra.mxu0 %v271_v12  ;;  %296 = vmatpush.bf16.msra.mxu2 %v271_v12 }
  0x22   :  { %260 = vmatmul.msk.bf16.vlgmr.msra.gmra.mxu1 %vm109_vm1, %v266_v14  ;;  %263 = vmatmul.msk.bf16.vlgmr.msra.gmra.mxu3 %vm109_vm1, %v269_v15 }
  0x23   :  { %259 = vmatmul.msk.bf16.vlgmr.msra.gmra.mxu0 %vm109_vm1, %v265_v16  ;;  %262 = vmatmul.msk.bf16.vlgmr.msra.gmra.mxu2 %vm109_vm1, %v268_v17 }
  0x32   :  { %261 = vmatmul.msk.bf16.gmra.mxu1 %vm109_vm1, %v267_v18  ;;  %264 = vmatmul.msk.bf16.gmra.mxu3 %vm109_vm1, %v270_v19 }
  0x75   :  { %v186_v26 = vpop.permute.xlu0 %185 }
  0x76   :  { %v196_v46 = vpop.permute.xlu1 %195 }
  0x7f   :  { %v191_v38 = vpop.permute.xlu0 %190 }
  0x9f   :  { %v146_v20 = vpop.f32.mrf.mxu1 }
  0xa0   :  { %v141_v23 = vpop.f32.mrf.mxu0 }
  0xa5   :  { %v161_v21 = vpop.f32.mrf.mxu3 }
  0xa6   :  { %v156_v24 = vpop.f32.mrf.mxu2 }
  0xa7   :  { %v148_v22 = vpop.f32.mrf.mxu1 }
  0xa8   :  { %v171_v27 = vmax.f32 %v141_v23, %v148_v22  ;;  %v143_v31 = vpop.f32.mrf.mxu0 }
  0xad   :  { %v163_v25 = vpop.f32.mrf.mxu3 }
  0xae   :  { %v174_v28 = vmax.f32 %v156_v24, %v163_v25  ;;  %v158_v33 = vpop.f32.mrf.mxu2 }
  0xaf   :  { %v151_v30 = vpop.f32.mrf.mxu1 }
  0xb0   :  { %v177_v29 = vmax.f32 %v171_v27, %v174_v28  ;;  %v172_v35 = vmax.f32 %v143_v31, %v151_v30 }
  0xb2   :  { %v198_v32 = vadd.f32 %v186_v26, %v177_v29 }
  0xb4   :  { %v201_v34 = vmax.f32 %v198_v32, 0.0 }
  0xb5   :  { %v166_v36 = vpop.f32.mrf.mxu3 }
  0xb6   :  { %204 = vst [vmem:[%s382_s3] sm:$0xff] %v201_v34  ;;  %v175_v37 = vmax.f32 %v158_v33, %v166_v36 }
  0xb7   :  { %v153_v41 = vpop.f32.mrf.mxu1 }
  0xb8   :  { %v178_v39 = vmax.f32 %v172_v35, %v175_v37  ;;  %v173_v44 = vmax.f32 %v146_v20, %v153_v41 }
  0xba   :  { %v199_v40 = vadd.f32 %v191_v38, %v178_v39 }
  0xbc   :  { %v202_v42 = vmax.f32 %v199_v40, 0.0 }
  0xbd   :  { %v168_v43 = vpop.f32.mrf.mxu3 }
  0xbe   :  { %205 = vst [vmem:[%s382_s3 + $0x8] sm:$0xff] %v202_v42  ;;  %v176_v45 = vmax.f32 %v161_v21, %v168_v43 }
  0xc0   :  { %v179_v47 = vmax.f32 %v173_v44, %v176_v45 }
  0xc2   :  { %v200_v48 = vadd.f32 %v196_v46, %v179_v47 }
  0xc4   :  { %v203_v49 = vmax.f32 %v200_v48, 0.0 }
  0xc6   :  { %206 = vst [vmem:[%s382_s3 + $0x10] sm:$0xf] %v203_v49 }

</bundles_post_ra>
